<compile_context>
chip_gen: v7x
topology: tpu7x:2x2x1
jax: 0.10.0
libtpu: 0.0.40
codegen_flags: <defaults>
</compile_context>

<pallas_src>
import jax
import jax.numpy as jnp
import numpy as np
from jax import lax
from jax.experimental import pallas as pl
from jax.experimental.pallas import tpu as pltpu

UP = 7      # torch.nn.Upsample(scale_factor=7)  (default mode='nearest')
POOL = 16   # torch.nn.AvgPool2d(kernel_size=16)


def _pool_matrix(n_in: int) -> np.ndarray:
    """A such that A @ x @ A.T == AvgPool2d(16)(Upsample(7, nearest)(x)) per channel."""
    n_up = n_in * UP
    n_out = n_up // POOL            # AvgPool2d floors, matching PyTorch
    A = np.zeros((n_out, n_in), dtype=np.float32)
    for i in range(n_out):
        for t in range(i * POOL, (i + 1) * POOL):
            A[i, t // UP] += 1.0 / POOL
    return A


def fold_image_encoder(w_img, C, H, W):
    """One-time fold: compose Upsample(7) + AvgPool2d(16) + flatten + linear
    encoder into a single (C*H*W, D) matrix (exact — the image path is linear).
    Returned in bf16 for MXU-native matmul."""
    A_h = jnp.asarray(_pool_matrix(H))          # (Ho, H)
    A_w = jnp.asarray(_pool_matrix(W))          # (Wo, W)
    Ho, Wo = A_h.shape[0], A_w.shape[0]
    D = w_img.shape[1]
    w_r = w_img.reshape(C, Ho, Wo, D)
    # M[c*H*W + h*W + w, d] = sum_{i,j} A_h[i,h] * A_w[j,w] * w_img[c,i,j,d]
    M = jnp.einsum("ih,jw,cijd->chwd", A_h, A_w, w_r).reshape(C * H * W, D)
    return M.astype(jnp.bfloat16)


# ---------------- single fused kernel ----------------------------------------
def _dclip_kernel(x1_ref, x2_ref, m_ref, e1_ref, e2_ref, wt_ref, o_ref):
    # Image path: pool + encode folded into M, applied to the image difference
    # (exact by linearity).  (1, 3072) bf16 @ (3072, 32) bf16 -> f32 accumulate.
    d_x = (x1_ref[...] - x2_ref[...]).astype(jnp.bfloat16)              # (1, F)
    d_img = jnp.dot(d_x, m_ref[...], preferred_element_type=jnp.float32)  # (1, D)

    # Text path: mean-pool token embeddings, project the difference (tiny, f32).
    d_t = (jnp.mean(e1_ref[...], axis=0, keepdims=True)
           - jnp.mean(e2_ref[...], axis=0, keepdims=True))              # (1, E)
    d_txt = jnp.dot(d_t, wt_ref[...], preferred_element_type=jnp.float32)  # (1, D)

    # torch.nn.CosineSimilarity(dim=1, eps=1e-8):  dot / max(|a|*|b|, 1e-8)
    num = jnp.sum(d_img * d_txt, axis=-1, keepdims=True)                # (1, 1)
    sq = (jnp.sum(d_img * d_img, axis=-1, keepdims=True)
          * jnp.sum(d_txt * d_txt, axis=-1, keepdims=True))
    sim = num * lax.rsqrt(jnp.maximum(sq, 1e-16))   # == num / max(sqrt(sq), 1e-8)
    o_ref[...] = 1.0 - sim


def dclip_loss(image1, image2, tok1, tok2, params):
    """image1/image2: (C, H, W) f32; tok1/tok2: (L,) int32 token ids.
    params = (M, w_txt, emb_table) with M = fold_image_encoder(w_img, C, H, W)."""
    M, w_txt, emb_table = params

    # image1.unsqueeze(0) / image2.unsqueeze(0): flatten row-major to (1, C*H*W)
    x1 = image1.astype(jnp.float32).reshape(1, -1)
    x2 = image2.astype(jnp.float32).reshape(1, -1)

    # TODO(synk): clip.tokenize (BPE string tokenizer) has no Pallas equivalent;
    # token ids are taken as inputs and the embedding gather is XLA-side glue.
    e1 = emb_table[tok1]                                                # (L, E)
    e2 = emb_table[tok2]                                                # (L, E)

    vmem = pltpu.MemorySpace.VMEM
    loss = pl.pallas_call(
        _dclip_kernel,
        out_shape=jax.ShapeDtypeStruct((1, 1), jnp.float32),
        in_specs=[pl.BlockSpec(memory_space=vmem)] * 6,
        out_specs=pl.BlockSpec(memory_space=vmem),
        compiler_params=pltpu.CompilerParams(vmem_limit_bytes=32 * 1024 * 1024),
    )(x1, x2, M, e1, e2, w_txt)

    return loss.reshape(1)   # matches torch: shape (1,) = 1 - cosine_similarity


# ---------------- pure-JAX unfused reference (correctness check) -------------
def _reference_loss(image1, image2, tok1, tok2, w_img, w_txt, emb_table):
    def pool(img):
        A_h = jnp.asarray(_pool_matrix(img.shape[1]))
        A_w = jnp.asarray(_pool_matrix(img.shape[2]))
        return jnp.einsum("ih,chw,jw->cij", A_h, img, A_w)
    f1 = pool(image1).reshape(1, -1) @ w_img
    f2 = pool(image2).reshape(1, -1) @ w_img
    t1 = jnp.mean(emb_table[tok1], axis=0, keepdims=True) @ w_txt
    t2 = jnp.mean(emb_table[tok2], axis=0, keepdims=True) @ w_txt
    di, dt = f1 - f2, t1 - t2
    sim = jnp.sum(di * dt) / jnp.maximum(
        jnp.linalg.norm(di) * jnp.linalg.norm(dt), 1e-8)
    return (1.0 - sim).reshape(1)


if __name__ == "__main__":
    key = jax.random.PRNGKey(0)
    k_i1, k_i2, k_t1, k_t2, k_wi, k_wt, k_emb = jax.random.split(key, 7)

    # small, module-consistent shapes
    C, H, W = 3, 32, 32          # image CHW; upsample x7 -> 224, avgpool 16 -> 14
    L, V, E, D = 16, 64, 48, 32  # seq len, vocab, text-embed dim, feature dim
    Ho, Wo = (H * UP) // POOL, (W * UP) // POOL
    F = C * Ho * Wo              # flattened pooled-image size (3*14*14 = 588)

    image1 = jax.random.normal(k_i1, (C, H, W), jnp.float32)
    image2 = jax.random.normal(k_i2, (C, H, W), jnp.float32)
    text1 = jax.random.randint(k_t1, (L,), 0, V, dtype=jnp.int32)
    text2 = jax.random.randint(k_t2, (L,), 0, V, dtype=jnp.int32)

    # deterministic synthetic "CLIP" parameters
    w_img = jax.random.normal(k_wi, (F, D), jnp.float32) * 0.02
    w_txt = jax.random.normal(k_wt, (E, D), jnp.float32) * 0.02
    emb_table = jax.random.normal(k_emb, (V, E), jnp.float32) * 0.02

    # one-time fold of the linear image path: (C*H*W, D) = (3072, 32), K 128-aligned
    M = fold_image_encoder(w_img, C, H, W)
    params = (M, w_txt, emb_table)

    loss = dclip_loss(image1, image2, text1, text2, params)
    jax.block_until_ready(loss)
    assert loss.shape == (1,)

    ref = _reference_loss(image1, image2, text1, text2, w_img, w_txt, emb_table)
    assert np.allclose(np.asarray(loss), np.asarray(ref), atol=5e-2), (loss, ref)

    print("KERNEL_OK")
</pallas_src>

<mosaic_0001>
module attributes {stable_mosaic.version = 11 : i64} {
  func.func @_dclip_kernel(%arg0: memref<1x3072xf32, #tpu.memory_space<vmem>>, %arg1: memref<1x3072xf32, #tpu.memory_space<vmem>>, %arg2: memref<3072x32xbf16, #tpu.memory_space<vmem>>, %arg3: memref<16x48xf32, #tpu.memory_space<vmem>>, %arg4: memref<16x48xf32, #tpu.memory_space<vmem>>, %arg5: memref<48x32xf32, #tpu.memory_space<vmem>>, %arg6: memref<1x1xf32, #tpu.memory_space<vmem>>) attributes {dimension_semantics = [], scalar_prefetch = 0 : i64, scratch_operands = 0 : i64, tpu.core_type = #tpu.core_type<tc>} {
    %c0 = arith.constant 0 : index
    %c0_0 = arith.constant 0 : index
    %0 = vector.load %arg0[%c0, %c0_0] : memref<1x3072xf32, #tpu.memory_space<vmem>>, vector<1x3072xf32>
    %c0_1 = arith.constant 0 : index
    %c0_2 = arith.constant 0 : index
    %1 = vector.load %arg1[%c0_1, %c0_2] : memref<1x3072xf32, #tpu.memory_space<vmem>>, vector<1x3072xf32>
    %2 = arith.subf %0, %1 : vector<1x3072xf32>
    %3 = arith.truncf %2 : vector<1x3072xf32> to vector<1x3072xbf16>
    %c0_3 = arith.constant 0 : index
    %c0_4 = arith.constant 0 : index
    %4 = vector.load %arg2[%c0_3, %c0_4] : memref<3072x32xbf16, #tpu.memory_space<vmem>>, vector<3072x32xbf16>
    %cst = arith.constant dense<0.000000e+00> : vector<1x32xf32>
    %5 = tpu.matmul %3, %4, %cst {dimension_numbers = #tpu.dot_dimension_numbers<[1], [0], [0], [1], [0, 0, 1, 1], [], []>} : vector<1x3072xbf16>, vector<3072x32xbf16>, vector<1x32xf32> -> vector<1x32xf32>
    %c0_5 = arith.constant 0 : index
    %c0_6 = arith.constant 0 : index
    %6 = vector.load %arg3[%c0_5, %c0_6] : memref<16x48xf32, #tpu.memory_space<vmem>>, vector<16x48xf32>
    %cst_7 = arith.constant dense<0.000000e+00> : vector<48xf32>
    %7 = vector.multi_reduction <add>, %6, %cst_7 [0] : vector<16x48xf32> to vector<48xf32>
    %8 = vector.shape_cast %7 : vector<48xf32> to vector<1x48xf32>
    %cst_8 = arith.constant 1.600000e+01 : f32
    %9 = vector.broadcast %cst_8 : f32 to vector<1x48xf32>
    %10 = arith.divf %8, %9 : vector<1x48xf32>
    %c0_9 = arith.constant 0 : index
    %c0_10 = arith.constant 0 : index
    %11 = vector.load %arg4[%c0_9, %c0_10] : memref<16x48xf32, #tpu.memory_space<vmem>>, vector<16x48xf32>
    %cst_11 = arith.constant dense<0.000000e+00> : vector<48xf32>
    %12 = vector.multi_reduction <add>, %11, %cst_11 [0] : vector<16x48xf32> to vector<48xf32>
    %13 = vector.shape_cast %12 : vector<48xf32> to vector<1x48xf32>
    %cst_12 = arith.constant 1.600000e+01 : f32
    %14 = vector.broadcast %cst_12 : f32 to vector<1x48xf32>
    %15 = arith.divf %13, %14 : vector<1x48xf32>
    %16 = arith.subf %10, %15 : vector<1x48xf32>
    %c0_13 = arith.constant 0 : index
    %c0_14 = arith.constant 0 : index
    %17 = vector.load %arg5[%c0_13, %c0_14] : memref<48x32xf32, #tpu.memory_space<vmem>>, vector<48x32xf32>
    %cst_15 = arith.constant dense<0.000000e+00> : vector<1x32xf32>
    %18 = tpu.matmul %16, %17, %cst_15 {dimension_numbers = #tpu.dot_dimension_numbers<[1], [0], [0], [1], [0, 0, 1, 1], [], []>} : vector<1x48xf32>, vector<48x32xf32>, vector<1x32xf32> -> vector<1x32xf32>
    %19 = arith.mulf %5, %18 : vector<1x32xf32>
    %cst_16 = arith.constant dense<0.000000e+00> : vector<1xf32>
    %20 = vector.multi_reduction <add>, %19, %cst_16 [1] : vector<1x32xf32> to vector<1xf32>
    %21 = vector.shape_cast %20 : vector<1xf32> to vector<1x1xf32>
    %22 = arith.mulf %5, %5 : vector<1x32xf32>
    %cst_17 = arith.constant dense<0.000000e+00> : vector<1xf32>
    %23 = vector.multi_reduction <add>, %22, %cst_17 [1] : vector<1x32xf32> to vector<1xf32>
    %24 = vector.shape_cast %23 : vector<1xf32> to vector<1x1xf32>
    %25 = arith.mulf %18, %18 : vector<1x32xf32>
    %cst_18 = arith.constant dense<0.000000e+00> : vector<1xf32>
    %26 = vector.multi_reduction <add>, %25, %cst_18 [1] : vector<1x32xf32> to vector<1xf32>
    %27 = vector.shape_cast %26 : vector<1xf32> to vector<1x1xf32>
    %28 = arith.mulf %24, %27 : vector<1x1xf32>
    %cst_19 = arith.constant 1.000000e-16 : f32
    %29 = vector.broadcast %cst_19 : f32 to vector<1x1xf32>
    %30 = arith.maximumf %28, %29 : vector<1x1xf32>
    %31 = math.rsqrt %30 : vector<1x1xf32>
    %32 = arith.mulf %21, %31 : vector<1x1xf32>
    %cst_20 = arith.constant 1.000000e+00 : f32
    %33 = vector.broadcast %cst_20 : f32 to vector<1x1xf32>
    %34 = arith.subf %33, %32 : vector<1x1xf32>
    %c0_21 = arith.constant 0 : index
    %c0_22 = arith.constant 0 : index
    %35 = vector.load %arg6[%c0_21, %c0_22] : memref<1x1xf32, #tpu.memory_space<vmem>>, vector<1x1xf32>
    tpu.vector_store %arg6[%c0_21, %c0_22], %34 {strides = array<i32>} : memref<1x1xf32, #tpu.memory_space<vmem>>, vector<1x1xf32>,
    return
  }
}

</mosaic_0001>

<bundles_post_ra>
// kernel: tpu_custom_call.1
= control target key start
LH: loop header
LB: loop body
LE: loop exit
PB: predicated region body
PF: predicated region fallthrough
CT: control target
= control target key end

     0   :  { %v37_v21 = vlaneseq  ;;  %vm2199_vm0 = vcmask 392192   ;;  %s3807_s0 = inlined_call_operand.vmem [shape: f32[1,3072], index: 0, kind: input, shape index: {}]   ;;  %s3808_s1 = inlined_call_operand.vmem [shape: f32[1,3072], index: 1, kind: input, shape index: {}]   ;;  %s3809_s2 = inlined_call_operand.vmem [shape: bf16[3072,32], index: 2, kind: input, shape index: {}]   ;;  %s3810_s3 = inlined_call_operand.vmem [shape: f32[16,48], index: 3, kind: input, shape index: {}]   ;;  %s3811_s4 = inlined_call_operand.vmem [shape: f32[16,48], index: 4, kind: input, shape index: {}]   ;;  %s3812_s5 = inlined_call_operand.vmem [shape: f32[48,32], index: 5, kind: input, shape index: {}]   ;;  %s3813_s6 = inlined_call_operand.hbm [shape: f32[1,1], index: 6, kind: output, shape index: {}]  }
   0x1   :  { %v2829_v0 = vld [vmem:[%s3809_s2 + $0x40] sm:$0xff]   ;;  %v2833_v4 = vld [vmem:[%s3809_s2 + $0x48] sm:$0xff]   ;;  %v2837_v8 = vld [vmem:[%s3809_s2 + $0x50] sm:$0xff]  }
   0x2   :  { %v2830_v1 = vld [vmem:[%s3809_s2 + $0xc0] sm:$0xff]   ;;  %2530 = vmatprep.subr.bf16.mxu0 %v2829_v0  ;;  %v2834_v5 = vld [vmem:[%s3809_s2 + $0xc8] sm:$0xff]   ;;  %v2838_v9 = vld [vmem:[%s3809_s2 + $0xd0] sm:$0xff]   ;;  %v3161_v26 = vshrl.u32 %v37_v21, 7 }
   0x3   :  { %v2831_v2 = vld [vmem:[%s3809_s2] sm:$0xff]   ;;  %2552 = vmatprep.subr.bf16.mxu1 %v2830_v1  ;;  %v2835_v6 = vld [vmem:[%s3809_s2 + $0x8] sm:$0xff]   ;;  %v2839_v10 = vld [vmem:[%s3809_s2 + $0x10] sm:$0xff]  }
   0x4   :  { %v2832_v3 = vld [vmem:[%s3809_s2 + $0x80] sm:$0xff]   ;;  %2531 = vmatpush3.bf16.msra.mxu0 %v2831_v2  ;;  %v2836_v7 = vld [vmem:[%s3809_s2 + $0x88] sm:$0xff]   ;;  %v2840_v11 = vld [vmem:[%s3809_s2 + $0x90] sm:$0xff]   ;;  %v3176_v31 = vsub.s32 1, %v3161_v26  ;;  %v3182_v33 = vsub.s32 3, %v3161_v26  ;;  %v3188_v35 = vsub.s32 0, %v3161_v26 }
   0x5   :  { %2553 = vmatpush3.bf16.msra.mxu1 %v2832_v3  ;;  %2532 = vmatprep.subr.bf16.mxu0 %v2833_v4  ;;  %v2841_v12 = vld [vmem:[%s3809_s2 + $0x58] sm:$0xff]   ;;  %v2845_v16 = vld [vmem:[%s3809_s2 + $0x60] sm:$0xff]   ;;  %v2849_v20 = vld [vmem:[%s3809_s2 + $0x68] sm:$0xff]   ;;  %v3194_v37 = vsub.s32 2, %v3161_v26  ;;  %v3203_v40 = vsub.s32 5, %v3161_v26  ;;  %v3206_v41 = vsub.s32 7, %v3161_v26 }
   0x6   :  { %2554 = vmatprep.subr.bf16.mxu1 %v2834_v5  ;;  %v2842_v13 = vld [vmem:[%s3809_s2 + $0xd8] sm:$0xff]   ;;  %v2846_v17 = vld [vmem:[%s3809_s2 + $0xe0] sm:$0xff]   ;;  %v2850_v22 = vld [vmem:[%s3809_s2 + $0xe8] sm:$0xff]  }
   0x7   :  { %v2843_v14 = vld [vmem:[%s3809_s2 + $0x18] sm:$0xff]   ;;  %v2847_v18 = vld [vmem:[%s3809_s2 + $0x20] sm:$0xff]   ;;  %v2851_v23 = vld [vmem:[%s3809_s2 + $0x28] sm:$0xff]  }
   0x8   :  { %2533 = vmatpush3.bf16.msra.mxu0 %v2835_v6  ;;  %v2844_v15 = vld [vmem:[%s3809_s2 + $0x98] sm:$0xff]   ;;  %v2848_v19 = vld [vmem:[%s3809_s2 + $0xa0] sm:$0xff]   ;;  %v2852_v24 = vld [vmem:[%s3809_s2 + $0xa8] sm:$0xff]  }
   0x9   :  { %2555 = vmatpush3.bf16.msra.mxu1 %v2836_v7  ;;  %2534 = vmatprep.subr.bf16.mxu0 %v2837_v8  ;;  %v2853_v25 = vld [vmem:[%s3809_s2 + $0x70] sm:$0xff]   ;;  %v2857_v30 = vld [vmem:[%s3809_s2 + $0x78] sm:$0xff]   ;;  %v25_v38 = vld [vmem:[%s3807_s0] sm:$0xff] }
   0xa   :  { %2556 = vmatprep.subr.bf16.mxu1 %v2838_v9  ;;  %v2854_v27 = vld [vmem:[%s3809_s2 + $0xf0] sm:$0xff]   ;;  %v2858_v32 = vld [vmem:[%s3809_s2 + $0xf8] sm:$0xff]   ;;  %v28_v39 = vld [vmem:[%s3808_s1] sm:$0xff] }
   0xb   :  { %v2855_v28 = vld [vmem:[%s3809_s2 + $0x30] sm:$0xff]   ;;  %v2859_v34 = vld [vmem:[%s3809_s2 + $0x38] sm:$0xff]   ;;  %v3208_v42 = vsub.f32 %v25_v38, %v28_v39  ;;  %v2861_v43 = vld [vmem:[%s3809_s2 + $0x140] sm:$0xff]  }
   0xc   :  { %2535 = vmatpush3.bf16.msra.mxu0 %v2839_v10  ;;  %v2856_v29 = vld [vmem:[%s3809_s2 + $0xb0] sm:$0xff]   ;;  %v2860_v36 = vld [vmem:[%s3809_s2 + $0xb8] sm:$0xff]   ;;  %v2862_v44 = vld [vmem:[%s3809_s2 + $0x1c0] sm:$0xff]  }
   0xd   :  { %2557 = vmatpush3.bf16.msra.mxu1 %v2840_v11  ;;  %2536 = vmatprep.subr.bf16.mxu0 %v2841_v12  ;;  %v44_v45 = vrot.slane %v3208_v42, %v3176_v31  ;;  %v52_v46 = vrot.slane %v3208_v42, %v3182_v33  ;;  %v40_v47 = vrot.slane %v3208_v42, %v3188_v35  ;;  %v2863_v49 = vld [vmem:[%s3809_s2 + $0x100] sm:$0xff]   ;;  %v2865_v57 = vld [vmem:[%s3809_s2 + $0x148] sm:$0xff]   ;;  %v2869_v63 = vld [vmem:[%s3809_s2 + $0x150] sm:$0xff]  }
   0xe   :  { %2558 = vmatprep.subr.bf16.mxu1 %v2842_v13  ;;  %v48_v48 = vrot.slane %v3208_v42, %v3194_v37  ;;  %v2864_v50 = vld [vmem:[%s3809_s2 + $0x180] sm:$0xff]   ;;  %v60_v51 = vrot.slane %v3208_v42, %v3203_v40  ;;  %v68_v52 = vrot.slane %v3208_v42, %v3206_v41  ;;  %v2866_v58 = vld [vmem:[%s3809_s2 + $0x1c8] sm:$0xff]   ;;  %v2870_v0 = vld [vmem:[%s3809_s2 + $0x1d0] sm:$0xff]  }
   0xf   :  { %v158_v53 = vpack.c.bf16 %v44_v45, %v44_v45  ;;  %v160_v54 = vpack.c.bf16 %v52_v46, %v52_v46  ;;  %v157_v55 = vpack.c.bf16 %v40_v47, %v40_v47  ;;  %v2867_v59 = vld [vmem:[%s3809_s2 + $0x108] sm:$0xff]   ;;  %v2871_v1 = vld [vmem:[%s3809_s2 + $0x110] sm:$0xff]   ;;  %v2873_v3 = vld [vmem:[%s3809_s2 + $0x158] sm:$0xff]  }
  0x10   :  { %2537 = vmatpush3.bf16.msra.mxu0 %v2843_v14  ;;  %v159_v56 = vpack.c.bf16 %v48_v48, %v48_v48  ;;  %v162_v60 = vpack.c.bf16 %v60_v51, %v60_v51  ;;  %v164_v61 = vpack.c.bf16 %v68_v52, %v68_v52  ;;  %v2868_v62 = vld [vmem:[%s3809_s2 + $0x188] sm:$0xff]   ;;  %v2872_v2 = vld [vmem:[%s3809_s2 + $0x190] sm:$0xff]   ;;  %v2874_v4 = vld [vmem:[%s3809_s2 + $0x1d8] sm:$0xff]  }
  0x11   :  { %2559 = vmatpush3.bf16.msra.mxu1 %v2844_v15  ;;  %2538 = vmatprep.subr.bf16.mxu0 %v2845_v16  ;;  %v2875_v5 = vld [vmem:[%s3809_s2 + $0x118] sm:$0xff]   ;;  %v2877_v7 = vld [vmem:[%s3809_s2 + $0x160] sm:$0xff]   ;;  %v2881_v11 = vld [vmem:[%s3809_s2 + $0x168] sm:$0xff]  }
  0x12   :  { %2560 = vmatprep.subr.bf16.mxu1 %v2846_v17  ;;  %1749 = vmatprep.mubr.bf16.mxu0 %v158_v53  ;;  %v2876_v6 = vld [vmem:[%s3809_s2 + $0x198] sm:$0xff]   ;;  %v2878_v8 = vld [vmem:[%s3809_s2 + $0x1e0] sm:$0xff]   ;;  %v2882_v12 = vld [vmem:[%s3809_s2 + $0x1e8] sm:$0xff]  }
  0x13   :  { %1789 = vmatprep.mubr.bf16.mxu1 %v160_v54  ;;  %v2879_v9 = vld [vmem:[%s3809_s2 + $0x120] sm:$0xff]   ;;  %v2883_v13 = vld [vmem:[%s3809_s2 + $0x128] sm:$0xff]   ;;  %v2885_v15 = vld [vmem:[%s3809_s2 + $0x170] sm:$0xff]  }
  0x14   :  { %2539 = vmatpush3.bf16.msra.mxu0 %v2847_v18  ;;  %v2880_v10 = vld [vmem:[%s3809_s2 + $0x1a0] sm:$0xff]   ;;  %v2884_v14 = vld [vmem:[%s3809_s2 + $0x1a8] sm:$0xff]   ;;  %v2886_v16 = vld [vmem:[%s3809_s2 + $0x1f0] sm:$0xff]   ;;  %v3304_v18 = vsub.s32 4, %v3161_v26 }
  0x15   :  { %2561 = vmatpush3.bf16.msra.mxu1 %v2848_v19  ;;  %2540 = vmatprep.subr.bf16.mxu0 %v2849_v20  ;;  %v2887_v17 = vld [vmem:[%s3809_s2 + $0x130] sm:$0xff]   ;;  %v3310_v20 = vsub.s32 6, %v3161_v26  ;;  %v2889_v21 = vld [vmem:[%s3809_s2 + $0x178] sm:$0xff]   ;;  %v2898_v38 = vld [vmem:[%s3809_s2 + $0x2c8] sm:$0xff]  }
  0x16   :  { %2562 = vmatprep.subr.bf16.mxu1 %v2850_v22  ;;  %v2888_v19 = vld [vmem:[%s3809_s2 + $0x1b0] sm:$0xff]   ;;  %v2890_v22 = vld [vmem:[%s3809_s2 + $0x1f8] sm:$0xff]   ;;  %v2899_v39 = vld [vmem:[%s3809_s2 + $0x208] sm:$0xff]  }
  0x17   :  { %v64_v26 = vrot.slane %v3208_v42, %v3310_v20  ;;  %v2903_v45 = vld [vmem:[%s3809_s2 + $0x210] sm:$0xff]   ;;  %v2905_v47 = vld [vmem:[%s3809_s2 + $0x258] sm:$0xff]   ;;  %v2909_v51 = vld [vmem:[%s3809_s2 + $0x260] sm:$0xff]  }
  0x18   :  { %2541 = vmatpush3.bf16.msra.mxu0 %v2851_v23  ;;  %v2891_v23 = vld [vmem:[%s3809_s2 + $0x138] sm:$0xff]   ;;  %v2904_v46 = vld [vmem:[%s3809_s2 + $0x290] sm:$0xff]   ;;  %v2910_v52 = vld [vmem:[%s3809_s2 + $0x2e0] sm:$0xff]  }
  0x19   :  { %2563 = vmatpush3.bf16.msra.mxu1 %v2852_v24  ;;  %2542 = vmatprep.subr.bf16.mxu0 %v2853_v25  ;;  %v2892_v24 = vld [vmem:[%s3809_s2 + $0x1b8] sm:$0xff]   ;;  %v56_v25 = vrot.slane %v3208_v42, %v3304_v18  ;;  %v2900_v42 = vld [vmem:[%s3809_s2 + $0x288] sm:$0xff]   ;;  %v2911_v53 = vld [vmem:[%s3809_s2 + $0x220] sm:$0xff]  }
  0x1a   :  { %2564 = vmatprep.subr.bf16.mxu1 %v2854_v27  ;;  %v2893_v27 = vld [vmem:[%s3809_s2 + $0x240] sm:$0xff]   ;;  %v2906_v48 = vld [vmem:[%s3809_s2 + $0x2d8] sm:$0xff]  }
  0x1b   :  { %v2912_v54 = vld [vmem:[%s3809_s2 + $0x2a0] sm:$0xff]  }
  0x1c   :  { %2543 = vmatpush3.bf16.msra.mxu0 %v2855_v28  ;;  %v2894_v28 = vld [vmem:[%s3809_s2 + $0x2c0] sm:$0xff]  }
  0x1d   :  { %2565 = vmatpush3.bf16.msra.mxu1 %v2856_v29  ;;  %2544 = vmatprep.subr.bf16.mxu0 %v2857_v30  ;;  %v2895_v29 = vld [vmem:[%s3809_s2 + $0x200] sm:$0xff]   ;;  %v161_v30 = vpack.c.bf16 %v56_v25, %v56_v25 }
  0x1e   :  { %2566 = vmatprep.subr.bf16.mxu1 %v2858_v32  ;;  %v163_v32 = vpack.c.bf16 %v64_v26, %v64_v26 }
  0x20   :  { %2545 = vmatpush3.bf16.msra.mxu0 %v2859_v34  ;;  %v2896_v34 = vld [vmem:[%s3809_s2 + $0x280] sm:$0xff]  }
  0x21   :  { %2567 = vmatpush3.bf16.msra.mxu1 %v2860_v36  ;;  %2574 = vmatprep.subr.bf16.mxu0 %v2861_v43  ;;  %v2897_v36 = vld [vmem:[%s3809_s2 + $0x248] sm:$0xff]   ;;  %v2901_v43 = vld [vmem:[%s3809_s2 + $0x250] sm:$0xff]  }
  0x22   :  { %2596 = vmatprep.subr.bf16.mxu1 %v2862_v44  ;;  %v2902_v44 = vld [vmem:[%s3809_s2 + $0x2d0] sm:$0xff]  }
  0x23   :  { %1750 = vmatmul.mubr.bf16.vlgmr.msra.gmra.mrb[0].mxu0 %v157_v55  ;;  %v2913_v55 = vld [vmem:[%s3809_s2 + $0x268] sm:$0xff]  }
  0x24   :  { %1790 = vmatmul.mubr.bf16.vlgmr.msra.gmra.mrb[0].mxu1 %v159_v56  ;;  %2575 = vmatpush3.bf16.msra.mxu0 %v2863_v49  ;;  %v2907_v49 = vld [vmem:[%s3809_s2 + $0x218] sm:$0xff]   ;;  %v2914_v56 = vld [vmem:[%s3809_s2 + $0x2e8] sm:$0xff]  }
  0x25   :  { %2597 = vmatpush3.bf16.msra.mxu1 %v2864_v50  ;;  %2576 = vmatprep.subr.bf16.mxu0 %v2865_v57  ;;  %v2908_v50 = vld [vmem:[%s3809_s2 + $0x298] sm:$0xff]   ;;  %v2915_v57 = vld [vmem:[%s3809_s2 + $0x228] sm:$0xff]  }
  0x26   :  { %2598 = vmatprep.subr.bf16.mxu1 %v2866_v58  ;;  %1829 = vmatprep.mubr.bf16.mxu0 %v162_v60  ;;  %v2916_v58 = vld [vmem:[%s3809_s2 + $0x2a8] sm:$0xff]   ;;  %v2918_v60 = vld [vmem:[%s3809_s2 + $0x2f0] sm:$0xff]  }
  0x27   :  { %1869 = vmatprep.mubr.bf16.mxu1 %v164_v61  ;;  %v2919_v61 = vld [vmem:[%s3809_s2 + $0x230] sm:$0xff]  }
  0x28   :  { %2577 = vmatpush3.bf16.msra.mxu0 %v2867_v59  ;;  %v2917_v59 = vld [vmem:[%s3809_s2 + $0x270] sm:$0xff]  }
  0x29   :  { %2599 = vmatpush3.bf16.msra.mxu1 %v2868_v62  ;;  %2578 = vmatprep.subr.bf16.mxu0 %v2869_v63  ;;  %v2920_v62 = vld [vmem:[%s3809_s2 + $0x2b0] sm:$0xff]   ;;  %v2921_v63 = vld [vmem:[%s3809_s2 + $0x278] sm:$0xff]  }
  0x2a   :  { %2600 = vmatprep.subr.bf16.mxu1 %v2870_v0  ;;  %v2922_v0 = vld [vmem:[%s3809_s2 + $0x2f8] sm:$0xff]  }
  0x2c   :  { %2579 = vmatpush3.bf16.msra.mxu0 %v2871_v1  ;;  %v2923_v1 = vld [vmem:[%s3809_s2 + $0x238] sm:$0xff]  }
  0x2d   :  { %2601 = vmatpush3.bf16.msra.mxu1 %v2872_v2  ;;  %2580 = vmatprep.subr.bf16.mxu0 %v2873_v3  ;;  %v2924_v2 = vld [vmem:[%s3809_s2 + $0x2b8] sm:$0xff]   ;;  %v26_v3 = vld [vmem:[%s3807_s0 + $0x8] sm:$0xff] }
  0x2e   :  { %2602 = vmatprep.subr.bf16.mxu1 %v2874_v4  ;;  %v29_v4 = vld [vmem:[%s3808_s1 + $0x8] sm:$0xff] }
  0x30   :  { %2581 = vmatpush3.bf16.msra.mxu0 %v2875_v5  ;;  %v3430_v5 = vsub.f32 %v26_v3, %v29_v4  ;;  %v2962_v3 = vld [vmem:[%s3809_s2 + $0x4c8] sm:$0xff]  }
  0x31   :  { %2603 = vmatpush3.bf16.msra.mxu1 %v2876_v6  ;;  %2582 = vmatprep.subr.bf16.mxu0 %v2877_v7  ;;  %v2925_v6 = vld [vmem:[%s3809_s2 + $0x340] sm:$0xff]   ;;  %v2963_v4 = vld [vmem:[%s3809_s2 + $0x408] sm:$0xff]  }
  0x32   :  { %2604 = vmatprep.subr.bf16.mxu1 %v2878_v8  ;;  %v2926_v7 = vld [vmem:[%s3809_s2 + $0x3c0] sm:$0xff]   ;;  %v76_v8 = vrot.slane %v3430_v5, %v3176_v31 }
  0x34   :  { %2583 = vmatpush3.bf16.msra.mxu0 %v2879_v9  ;;  %v72_v9 = vrot.slane %v3430_v5, %v3188_v35 }
  0x35   :  { %2605 = vmatpush3.bf16.msra.mxu1 %v2880_v10  ;;  %2584 = vmatprep.subr.bf16.mxu0 %v2881_v11  ;;  %v84_v10 = vrot.slane %v3430_v5, %v3182_v33  ;;  %v80_v11 = vrot.slane %v3430_v5, %v3194_v37 }
  0x36   :  { %2606 = vmatprep.subr.bf16.mxu1 %v2882_v12  ;;  %v2927_v12 = vld [vmem:[%s3809_s2 + $0x300] sm:$0xff]  }
  0x38   :  { %2585 = vmatpush3.bf16.msra.mxu0 %v2883_v13  ;;  %v2928_v13 = vld [vmem:[%s3809_s2 + $0x380] sm:$0xff]  }
  0x39   :  { %2607 = vmatpush3.bf16.msra.mxu1 %v2884_v14  ;;  %2586 = vmatprep.subr.bf16.mxu0 %v2885_v15  ;;  %v92_v14 = vrot.slane %v3430_v5, %v3203_v40  ;;  %v100_v15 = vrot.slane %v3430_v5, %v3206_v41 }
  0x3a   :  { %2608 = vmatprep.subr.bf16.mxu1 %v2886_v16  ;;  %v166_v16 = vpack.c.bf16 %v76_v8, %v76_v8  ;;  %v2967_v8 = vld [vmem:[%s3809_s2 + $0x410] sm:$0xff]  }
  0x3b   :  { %v170_v25 = vpack.c.bf16 %v92_v14, %v92_v14  ;;  %v172_v26 = vpack.c.bf16 %v100_v15, %v100_v15  ;;  %v2973_v14 = vld [vmem:[%s3809_s2 + $0x460] sm:$0xff]  }
  0x3c   :  { %2587 = vmatpush3.bf16.msra.mxu0 %v2887_v17  ;;  %v165_v17 = vpack.c.bf16 %v72_v9, %v72_v9  ;;  %v2968_v9 = vld [vmem:[%s3809_s2 + $0x490] sm:$0xff]   ;;  %v2974_v15 = vld [vmem:[%s3809_s2 + $0x4e0] sm:$0xff]  }
  0x3d   :  { %2609 = vmatpush3.bf16.msra.mxu1 %v2888_v19  ;;  %2588 = vmatprep.subr.bf16.mxu0 %v2889_v21  ;;  %v168_v19 = vpack.c.bf16 %v84_v10, %v84_v10  ;;  %v2929_v21 = vld [vmem:[%s3809_s2 + $0x348] sm:$0xff]   ;;  %v2969_v10 = vld [vmem:[%s3809_s2 + $0x458] sm:$0xff]  }
  0x3e   :  { %2610 = vmatprep.subr.bf16.mxu1 %v2890_v22  ;;  %v167_v22 = vpack.c.bf16 %v80_v11, %v80_v11  ;;  %v2970_v11 = vld [vmem:[%s3809_s2 + $0x4d8] sm:$0xff]  }
  0x40   :  { %2589 = vmatpush3.bf16.msra.mxu0 %v2891_v23  ;;  %v2930_v23 = vld [vmem:[%s3809_s2 + $0x3c8] sm:$0xff]  }
  0x41   :  { %2611 = vmatpush3.bf16.msra.mxu1 %v2892_v24  ;;  %2618 = vmatprep.subr.bf16.mxu0 %v2893_v27  ;;  %v2931_v24 = vld [vmem:[%s3809_s2 + $0x308] sm:$0xff]  }
  0x42   :  { %2640 = vmatprep.subr.bf16.mxu1 %v2894_v28  ;;  %v2932_v27 = vld [vmem:[%s3809_s2 + $0x388] sm:$0xff]   ;;  %v2933_v28 = vld [vmem:[%s3809_s2 + $0x350] sm:$0xff]  }
  0x43   :  { %1830 = vmatmul.mubr.bf16.vlgmr.msra.gmra.mrb[4].mxu0 %v161_v30  ;;  %v2935_v30 = vld [vmem:[%s3809_s2 + $0x310] sm:$0xff]  }
  0x44   :  { %1870 = vmatmul.mubr.bf16.vlgmr.msra.gmra.mrb[4].mxu1 %v163_v32  ;;  %2619 = vmatpush3.bf16.msra.mxu0 %v2895_v29  ;;  %v2934_v29 = vld [vmem:[%s3809_s2 + $0x3d0] sm:$0xff]  }
  0x45   :  { %2641 = vmatpush3.bf16.msra.mxu1 %v2896_v34  ;;  %2620 = vmatprep.subr.bf16.mxu0 %v2897_v36  ;;  %v2936_v32 = vld [vmem:[%s3809_s2 + $0x390] sm:$0xff]   ;;  %v2937_v34 = vld [vmem:[%s3809_s2 + $0x358] sm:$0xff]  }
  0x46   :  { %2642 = vmatprep.subr.bf16.mxu1 %v2898_v38  ;;  %1909 = vmatprep.mubr.bf16.mxu0 %v166_v16  ;;  %v2938_v36 = vld [vmem:[%s3809_s2 + $0x3d8] sm:$0xff]   ;;  %v2975_v16 = vld [vmem:[%s3809_s2 + $0x420] sm:$0xff]  }
  0x47   :  { %1949 = vmatprep.mubr.bf16.mxu1 %v168_v19  ;;  %v2939_v38 = vld [vmem:[%s3809_s2 + $0x318] sm:$0xff]   ;;  %v2977_v19 = vld [vmem:[%s3809_s2 + $0x468] sm:$0xff]  }
  0x48   :  { %2621 = vmatpush3.bf16.msra.mxu0 %v2899_v39  ;;  %v2940_v39 = vld [vmem:[%s3809_s2 + $0x398] sm:$0xff]  }
  0x49   :  { %2643 = vmatpush3.bf16.msra.mxu1 %v2900_v42  ;;  %2622 = vmatprep.subr.bf16.mxu0 %v2901_v43  ;;  %v2941_v42 = vld [vmem:[%s3809_s2 + $0x360] sm:$0xff]  }
  0x4a   :  { %2644 = vmatprep.subr.bf16.mxu1 %v2902_v44  ;;  %v2942_v43 = vld [vmem:[%s3809_s2 + $0x3e0] sm:$0xff]  }
  0x4b   :  { %v2943_v44 = vld [vmem:[%s3809_s2 + $0x320] sm:$0xff]  }
  0x4c   :  { %2623 = vmatpush3.bf16.msra.mxu0 %v2903_v45  ;;  %v2944_v45 = vld [vmem:[%s3809_s2 + $0x3a0] sm:$0xff]  }
  0x4d   :  { %2645 = vmatpush3.bf16.msra.mxu1 %v2904_v46  ;;  %2624 = vmatprep.subr.bf16.mxu0 %v2905_v47  ;;  %v2945_v46 = vld [vmem:[%s3809_s2 + $0x368] sm:$0xff]  }
  0x4e   :  { %2646 = vmatprep.subr.bf16.mxu1 %v2906_v48  ;;  %v2946_v47 = vld [vmem:[%s3809_s2 + $0x3e8] sm:$0xff]  }
  0x4f   :  { %v2947_v48 = vld [vmem:[%s3809_s2 + $0x328] sm:$0xff]  }
  0x50   :  { %2625 = vmatpush3.bf16.msra.mxu0 %v2907_v49  ;;  %v2948_v49 = vld [vmem:[%s3809_s2 + $0x3a8] sm:$0xff]  }
  0x51   :  { %2647 = vmatpush3.bf16.msra.mxu1 %v2908_v50  ;;  %2626 = vmatprep.subr.bf16.mxu0 %v2909_v51  ;;  %v2949_v50 = vld [vmem:[%s3809_s2 + $0x370] sm:$0xff]  }
  0x52   :  { %2648 = vmatprep.subr.bf16.mxu1 %v2910_v52  ;;  %v2950_v51 = vld [vmem:[%s3809_s2 + $0x3f0] sm:$0xff]  }
  0x53   :  { %v2951_v52 = vld [vmem:[%s3809_s2 + $0x330] sm:$0xff]  }
  0x54   :  { %2627 = vmatpush3.bf16.msra.mxu0 %v2911_v53  ;;  %v2952_v53 = vld [vmem:[%s3809_s2 + $0x3b0] sm:$0xff]  }
  0x55   :  { %2649 = vmatpush3.bf16.msra.mxu1 %v2912_v54  ;;  %2628 = vmatprep.subr.bf16.mxu0 %v2913_v55  ;;  %v2953_v54 = vld [vmem:[%s3809_s2 + $0x378] sm:$0xff]  }
  0x56   :  { %2650 = vmatprep.subr.bf16.mxu1 %v2914_v56  ;;  %v2954_v55 = vld [vmem:[%s3809_s2 + $0x3f8] sm:$0xff]  }
  0x57   :  { %v2955_v56 = vld [vmem:[%s3809_s2 + $0x338] sm:$0xff]  }
  0x58   :  { %2629 = vmatpush3.bf16.msra.mxu0 %v2915_v57  ;;  %v2956_v57 = vld [vmem:[%s3809_s2 + $0x3b8] sm:$0xff]  }
  0x59   :  { %2651 = vmatpush3.bf16.msra.mxu1 %v2916_v58  ;;  %2630 = vmatprep.subr.bf16.mxu0 %v2917_v59  ;;  %v88_v58 = vrot.slane %v3430_v5, %v3304_v18  ;;  %v96_v59 = vrot.slane %v3430_v5, %v3310_v20  ;;  %v2964_v5 = vld [vmem:[%s3809_s2 + $0x488] sm:$0xff]  }
  0x5a   :  { %2652 = vmatprep.subr.bf16.mxu1 %v2918_v60  ;;  %v2957_v60 = vld [vmem:[%s3809_s2 + $0x440] sm:$0xff]  }
  0x5c   :  { %2631 = vmatpush3.bf16.msra.mxu0 %v2919_v61  ;;  %v2958_v61 = vld [vmem:[%s3809_s2 + $0x4c0] sm:$0xff]  }
  0x5d   :  { %2653 = vmatpush3.bf16.msra.mxu1 %v2920_v62  ;;  %2632 = vmatprep.subr.bf16.mxu0 %v2921_v63  ;;  %v2959_v62 = vld [vmem:[%s3809_s2 + $0x400] sm:$0xff]   ;;  %v169_v63 = vpack.c.bf16 %v88_v58, %v88_v58  ;;  %v3000_v58 = vld [vmem:[%s3809_s2 + $0x590] sm:$0xff]  }
  0x5e   :  { %2654 = vmatprep.subr.bf16.mxu1 %v2922_v0  ;;  %v171_v0 = vpack.c.bf16 %v96_v59, %v96_v59  ;;  %v3001_v59 = vld [vmem:[%s3809_s2 + $0x558] sm:$0xff]  }
  0x60   :  { %2633 = vmatpush3.bf16.msra.mxu0 %v2923_v1  ;;  %v2960_v1 = vld [vmem:[%s3809_s2 + $0x480] sm:$0xff]  }
  0x61   :  { %2655 = vmatpush3.bf16.msra.mxu1 %v2924_v2  ;;  %2662 = vmatprep.subr.bf16.mxu0 %v2925_v6  ;;  %v2961_v2 = vld [vmem:[%s3809_s2 + $0x448] sm:$0xff]   ;;  %v2965_v6 = vld [vmem:[%s3809_s2 + $0x450] sm:$0xff]  }
  0x62   :  { %2684 = vmatprep.subr.bf16.mxu1 %v2926_v7  ;;  %v2966_v7 = vld [vmem:[%s3809_s2 + $0x4d0] sm:$0xff]  }
  0x63   :  { %1910 = vmatmul.mubr.bf16.vlgmr.msra.gmra.mrb[8].mxu0 %v165_v17  ;;  %v2976_v17 = vld [vmem:[%s3809_s2 + $0x4a0] sm:$0xff]  }
  0x64   :  { %1950 = vmatmul.mubr.bf16.vlgmr.msra.gmra.mrb[8].mxu1 %v167_v22  ;;  %2663 = vmatpush3.bf16.msra.mxu0 %v2927_v12  ;;  %v2971_v12 = vld [vmem:[%s3809_s2 + $0x418] sm:$0xff]   ;;  %v2979_v22 = vld [vmem:[%s3809_s2 + $0x428] sm:$0xff]  }
  0x65   :  { %2685 = vmatpush3.bf16.msra.mxu1 %v2928_v13  ;;  %2664 = vmatprep.subr.bf16.mxu0 %v2929_v21  ;;  %v2972_v13 = vld [vmem:[%s3809_s2 + $0x498] sm:$0xff]   ;;  %v2978_v21 = vld [vmem:[%s3809_s2 + $0x4e8] sm:$0xff]  }
  0x66   :  { %2686 = vmatprep.subr.bf16.mxu1 %v2930_v23  ;;  %1989 = vmatprep.mubr.bf16.mxu0 %v170_v25  ;;  %v2980_v23 = vld [vmem:[%s3809_s2 + $0x4a8] sm:$0xff]   ;;  %v2982_v25 = vld [vmem:[%s3809_s2 + $0x4f0] sm:$0xff]  }
  0x67   :  { %2029 = vmatprep.mubr.bf16.mxu1 %v172_v26  ;;  %v2983_v26 = vld [vmem:[%s3809_s2 + $0x430] sm:$0xff]  }
  0x68   :  { %2665 = vmatpush3.bf16.msra.mxu0 %v2931_v24  ;;  %v2981_v24 = vld [vmem:[%s3809_s2 + $0x470] sm:$0xff]  }
  0x69   :  { %2687 = vmatpush3.bf16.msra.mxu1 %v2932_v27  ;;  %2666 = vmatprep.subr.bf16.mxu0 %v2933_v28  ;;  %v2984_v27 = vld [vmem:[%s3809_s2 + $0x4b0] sm:$0xff]   ;;  %v2985_v28 = vld [vmem:[%s3809_s2 + $0x478] sm:$0xff]  }
  0x6a   :  { %2688 = vmatprep.subr.bf16.mxu1 %v2934_v29  ;;  %v2986_v29 = vld [vmem:[%s3809_s2 + $0x4f8] sm:$0xff]  }
  0x6c   :  { %2667 = vmatpush3.bf16.msra.mxu0 %v2935_v30  ;;  %v2987_v30 = vld [vmem:[%s3809_s2 + $0x438] sm:$0xff]  }
  0x6d   :  { %2689 = vmatpush3.bf16.msra.mxu1 %v2936_v32  ;;  %2668 = vmatprep.subr.bf16.mxu0 %v2937_v34  ;;  %v2988_v32 = vld [vmem:[%s3809_s2 + $0x4b8] sm:$0xff]   ;;  %v27_v34 = vld [vmem:[%s3807_s0 + $0x10] sm:$0xff] }
  0x6e   :  { %2690 = vmatprep.subr.bf16.mxu1 %v2938_v36  ;;  %v30_v36 = vld [vmem:[%s3808_s1 + $0x10] sm:$0xff] }
  0x70   :  { %2669 = vmatpush3.bf16.msra.mxu0 %v2939_v38  ;;  %v3646_v38 = vsub.f32 %v27_v34, %v30_v36 }
  0x71   :  { %2691 = vmatpush3.bf16.msra.mxu1 %v2940_v39  ;;  %2670 = vmatprep.subr.bf16.mxu0 %v2941_v42  ;;  %v2989_v39 = vld [vmem:[%s3809_s2 + $0x540] sm:$0xff]  }
  0x72   :  { %2692 = vmatprep.subr.bf16.mxu1 %v2942_v43  ;;  %v2990_v42 = vld [vmem:[%s3809_s2 + $0x5c0] sm:$0xff]   ;;  %v108_v43 = vrot.slane %v3646_v38, %v3176_v31  ;;  %v124_v31 = vrot.slane %v3646_v38, %v3203_v40  ;;  %v2995_v40 = vld [vmem:[%s3809_s2 + $0x508] sm:$0xff]  }
  0x74   :  { %2671 = vmatpush3.bf16.msra.mxu0 %v2943_v44  ;;  %v104_v44 = vrot.slane %v3646_v38, %v3188_v35  ;;  %v132_v35 = vrot.slane %v3646_v38, %v3206_v41  ;;  %v178_v41 = vpack.c.bf16 %v124_v31, %v124_v31 }
  0x75   :  { %2693 = vmatpush3.bf16.msra.mxu1 %v2944_v45  ;;  %2672 = vmatprep.subr.bf16.mxu0 %v2945_v46  ;;  %v116_v45 = vrot.slane %v3646_v38, %v3182_v33  ;;  %v112_v46 = vrot.slane %v3646_v38, %v3194_v37  ;;  %v174_v33 = vpack.c.bf16 %v108_v43, %v108_v43  ;;  %v2993_v37 = vld [vmem:[%s3809_s2 + $0x548] sm:$0xff]  }
  0x76   :  { %2694 = vmatprep.subr.bf16.mxu1 %v2946_v47  ;;  %v2991_v47 = vld [vmem:[%s3809_s2 + $0x500] sm:$0xff]  }
  0x78   :  { %2673 = vmatpush3.bf16.msra.mxu0 %v2947_v48  ;;  %v2992_v48 = vld [vmem:[%s3809_s2 + $0x580] sm:$0xff]  }
  0x79   :  { %2695 = vmatpush3.bf16.msra.mxu1 %v2948_v49  ;;  %2674 = vmatprep.subr.bf16.mxu0 %v2949_v50  ;;  %v173_v49 = vpack.c.bf16 %v104_v44, %v104_v44  ;;  %v176_v50 = vpack.c.bf16 %v116_v45, %v116_v45 }
  0x7a   :  { %2696 = vmatprep.subr.bf16.mxu1 %v2950_v51  ;;  %v175_v51 = vpack.c.bf16 %v112_v46, %v112_v46 }
  0x7c   :  { %2675 = vmatpush3.bf16.msra.mxu0 %v2951_v52  ;;  %v2994_v52 = vld [vmem:[%s3809_s2 + $0x5c8] sm:$0xff]  }
  0x7d   :  { %2697 = vmatpush3.bf16.msra.mxu1 %v2952_v53  ;;  %2676 = vmatprep.subr.bf16.mxu0 %v2953_v54  ;;  %v180_v53 = vpack.c.bf16 %v132_v35, %v132_v35  ;;  %v2996_v54 = vld [vmem:[%s3809_s2 + $0x588] sm:$0xff]  }
  0x7e   :  { %2698 = vmatprep.subr.bf16.mxu1 %v2954_v55  ;;  %v2997_v55 = vld [vmem:[%s3809_s2 + $0x550] sm:$0xff]  }
  0x80   :  { %2677 = vmatpush3.bf16.msra.mxu0 %v2955_v56  ;;  %v2998_v56 = vld [vmem:[%s3809_s2 + $0x5d0] sm:$0xff]  }
  0x81   :  { %2699 = vmatpush3.bf16.msra.mxu1 %v2956_v57  ;;  %2706 = vmatprep.subr.bf16.mxu0 %v2957_v60  ;;  %v2999_v57 = vld [vmem:[%s3809_s2 + $0x510] sm:$0xff]   ;;  %v3002_v60 = vld [vmem:[%s3809_s2 + $0x5d8] sm:$0xff]  }
  0x82   :  { %2728 = vmatprep.subr.bf16.mxu1 %v2958_v61  ;;  %v3003_v61 = vld [vmem:[%s3809_s2 + $0x518] sm:$0xff]  }
  0x83   :  { %1990 = vmatmul.mubr.bf16.vlgmr.msra.gmra.mrb[12].mxu0 %v169_v63  ;;  %v3005_v63 = vld [vmem:[%s3809_s2 + $0x560] sm:$0xff]  }
  0x84   :  { %2030 = vmatmul.mubr.bf16.vlgmr.msra.gmra.mrb[12].mxu1 %v171_v0  ;;  %2707 = vmatpush3.bf16.msra.mxu0 %v2959_v62  ;;  %v3004_v62 = vld [vmem:[%s3809_s2 + $0x598] sm:$0xff]   ;;  %v3006_v0 = vld [vmem:[%s3809_s2 + $0x5e0] sm:$0xff]  }
  0x85   :  { %2729 = vmatpush3.bf16.msra.mxu1 %v2960_v1  ;;  %2708 = vmatprep.subr.bf16.mxu0 %v2961_v2  ;;  %v3007_v1 = vld [vmem:[%s3809_s2 + $0x520] sm:$0xff]  }
  0x86   :  { %2730 = vmatprep.subr.bf16.mxu1 %v2962_v3  ;;  %2069 = vmatprep.mubr.bf16.mxu0 %v174_v33  ;;  %v3008_v2 = vld [vmem:[%s3809_s2 + $0x5a0] sm:$0xff]   ;;  %v3009_v3 = vld [vmem:[%s3809_s2 + $0x568] sm:$0xff]  }
  0x87   :  { %2109 = vmatprep.mubr.bf16.mxu1 %v176_v50 }
  0x88   :  { %2709 = vmatpush3.bf16.msra.mxu0 %v2963_v4  ;;  %v3010_v4 = vld [vmem:[%s3809_s2 + $0x5e8] sm:$0xff]  }
  0x89   :  { %2731 = vmatpush3.bf16.msra.mxu1 %v2964_v5  ;;  %2710 = vmatprep.subr.bf16.mxu0 %v2965_v6  ;;  %v3011_v5 = vld [vmem:[%s3809_s2 + $0x528] sm:$0xff]  }
  0x8a   :  { %2732 = vmatprep.subr.bf16.mxu1 %v2966_v7  ;;  %v3012_v6 = vld [vmem:[%s3809_s2 + $0x5a8] sm:$0xff]   ;;  %v3013_v7 = vld [vmem:[%s3809_s2 + $0x570] sm:$0xff]  }
  0x8c   :  { %2711 = vmatpush3.bf16.msra.mxu0 %v2967_v8  ;;  %v3014_v8 = vld [vmem:[%s3809_s2 + $0x5f0] sm:$0xff]  }
  0x8d   :  { %2733 = vmatpush3.bf16.msra.mxu1 %v2968_v9  ;;  %2712 = vmatprep.subr.bf16.mxu0 %v2969_v10  ;;  %v3015_v9 = vld [vmem:[%s3809_s2 + $0x530] sm:$0xff]  }
  0x8e   :  { %2734 = vmatprep.subr.bf16.mxu1 %v2970_v11  ;;  %v3016_v10 = vld [vmem:[%s3809_s2 + $0x5b0] sm:$0xff]   ;;  %v3017_v11 = vld [vmem:[%s3809_s2 + $0x578] sm:$0xff]  }
  0x90   :  { %2713 = vmatpush3.bf16.msra.mxu0 %v2971_v12  ;;  %v3018_v12 = vld [vmem:[%s3809_s2 + $0x5f8] sm:$0xff]  }
  0x91   :  { %2735 = vmatpush3.bf16.msra.mxu1 %v2972_v13  ;;  %2714 = vmatprep.subr.bf16.mxu0 %v2973_v14  ;;  %v120_v13 = vrot.slane %v3646_v38, %v3304_v18  ;;  %v128_v14 = vrot.slane %v3646_v38, %v3310_v20  ;;  %v2224_v18 = vld [vmem:[%s3812_s5] sm:$0xff]  ;;  %v2225_v20 = vld [vmem:[%s3812_s5 + $0x8] sm:$0xff] }
  0x92   :  { %2736 = vmatprep.subr.bf16.mxu1 %v2974_v15  ;;  %v3019_v15 = vld [vmem:[%s3809_s2 + $0x538] sm:$0xff]  }
  0x94   :  { %2715 = vmatpush3.bf16.msra.mxu0 %v2975_v16  ;;  %v3020_v16 = vld [vmem:[%s3809_s2 + $0x5b8] sm:$0xff]  }
  0x95   :  { %2737 = vmatpush3.bf16.msra.mxu1 %v2976_v17  ;;  %2716 = vmatprep.subr.bf16.mxu0 %v2977_v19  ;;  %v177_v17 = vpack.c.bf16 %v120_v13, %v120_v13  ;;  %v2197_v19 = vld [vmem:[%s3810_s3] sm:$0xff] }
  0x96   :  { %2738 = vmatprep.subr.bf16.mxu1 %v2978_v21  ;;  %v2198_v21 = vld [vmem:[%s3810_s3 + $0x8] sm:$0xff] }
  0x98   :  { %2717 = vmatpush3.bf16.msra.mxu0 %v2979_v22  ;;  %v2211_v22 = vld [vmem:[%s3811_s4] sm:$0xff] }
  0x99   :  { %2739 = vmatpush3.bf16.msra.mxu1 %v2980_v23  ;;  %2718 = vmatprep.subr.bf16.mxu0 %v2981_v24  ;;  %v179_v23 = vpack.c.bf16 %v128_v14, %v128_v14  ;;  %v2200_v24 = vsel %vm2199_vm0, %v2197_v19, 0.0 }
  0x9a   :  { %2740 = vmatprep.subr.bf16.mxu1 %v2982_v25  ;;  %v2201_v25 = vsel %vm2199_vm0, %v2198_v21, 0.0 }
  0x9c   :  { %2719 = vmatpush3.bf16.msra.mxu0 %v2983_v26  ;;  %v2212_v26 = vld [vmem:[%s3811_s4 + $0x8] sm:$0xff] }
  0x9d   :  { %2741 = vmatpush3.bf16.msra.mxu1 %v2984_v27  ;;  %2720 = vmatprep.subr.bf16.mxu0 %v2985_v28  ;;  %v2213_v27 = vsel %vm2199_vm0, %v2211_v22, 0.0 }
  0x9e   :  { %2742 = vmatprep.subr.bf16.mxu1 %v2986_v29 }
  0xa0   :  { %2721 = vmatpush3.bf16.msra.mxu0 %v2987_v30 }
  0xa1   :  { %2743 = vmatpush3.bf16.msra.mxu1 %v2988_v32  ;;  %2750 = vmatprep.subr.bf16.mxu0 %v2989_v39 }
  0xa2   :  { %2772 = vmatprep.subr.bf16.mxu1 %v2990_v42 }
  0xa3   :  { %2070 = vmatmul.mubr.bf16.vlgmr.msra.gmra.mrb[16].mxu0 %v173_v49 }
  0xa4   :  { %2110 = vmatmul.mubr.bf16.vlgmr.msra.gmra.mrb[16].mxu1 %v175_v51  ;;  %2751 = vmatpush3.bf16.msra.mxu0 %v2991_v47 }
  0xa5   :  { %2773 = vmatpush3.bf16.msra.mxu1 %v2992_v48  ;;  %2752 = vmatprep.subr.bf16.mxu0 %v2993_v37 }
  0xa6   :  { %2774 = vmatprep.subr.bf16.mxu1 %v2994_v52  ;;  %2149 = vmatprep.mubr.bf16.mxu0 %v178_v41 }
  0xa7   :  { %2189 = vmatprep.mubr.bf16.mxu1 %v180_v53 }
  0xa8   :  { %2753 = vmatpush3.bf16.msra.mxu0 %v2995_v40 }
  0xa9   :  { %2775 = vmatpush3.bf16.msra.mxu1 %v2996_v54  ;;  %2754 = vmatprep.subr.bf16.mxu0 %v2997_v55 }
  0xaa   :  { %2776 = vmatprep.subr.bf16.mxu1 %v2998_v56 }
  0xac   :  { %2755 = vmatpush3.bf16.msra.mxu0 %v2999_v57 }
  0xad   :  { %2777 = vmatpush3.bf16.msra.mxu1 %v3000_v58  ;;  %2756 = vmatprep.subr.bf16.mxu0 %v3001_v59 }
  0xae   :  { %2778 = vmatprep.subr.bf16.mxu1 %v3002_v60 }
  0xb0   :  { %2757 = vmatpush3.bf16.msra.mxu0 %v3003_v61 }
  0xb1   :  { %2779 = vmatpush3.bf16.msra.mxu1 %v3004_v62  ;;  %2758 = vmatprep.subr.bf16.mxu0 %v3005_v63 }
  0xb2   :  { %2780 = vmatprep.subr.bf16.mxu1 %v3006_v0 }
  0xb4   :  { %2759 = vmatpush3.bf16.msra.mxu0 %v3007_v1 }
  0xb5   :  { %2781 = vmatpush3.bf16.msra.mxu1 %v3008_v2  ;;  %2760 = vmatprep.subr.bf16.mxu0 %v3009_v3 }
  0xb6   :  { %2782 = vmatprep.subr.bf16.mxu1 %v3010_v4 }
  0xb8   :  { %2761 = vmatpush3.bf16.msra.mxu0 %v3011_v5 }
  0xb9   :  { %2783 = vmatpush3.bf16.msra.mxu1 %v3012_v6  ;;  %2762 = vmatprep.subr.bf16.mxu0 %v3013_v7 }
  0xba   :  { %2784 = vmatprep.subr.bf16.mxu1 %v3014_v8 }
  0xbc   :  { %2763 = vmatpush3.bf16.msra.mxu0 %v3015_v9 }
  0xbd   :  { %2785 = vmatpush3.bf16.msra.mxu1 %v3016_v10  ;;  %2764 = vmatprep.subr.bf16.mxu0 %v3017_v11 }
  0xbe   :  { %2786 = vmatprep.subr.bf16.mxu1 %v3018_v12 }
  0xbf   :  { %11 = vsyncpa [#allocation3], 0  ;;  %v2817_v28 = vpack.c.bf16 %v2225_v20, %v2224_v18  ;;  %v2202_v29 = vadd.f32 %v2201_v25, %v2200_v24  ;;  %v2214_v30 = vsel %vm2199_vm0, %v2212_v26, 0.0  ;;  %v3047_v32 = vmov 0.0|0.0   ;;  %v2226_v34 = vld [vmem:[%s3812_s5 + $0x10] sm:$0xff]  ;;  %v2227_v36 = vld [vmem:[%s3812_s5 + $0x18] sm:$0xff] }
  0xc0   :  { %2765 = vmatpush3.bf16.msra.mxu0 %v3019_v15  ;;  %v2215_v38 = vadd.f32 %v2214_v30, %v2213_v27  ;;  %v2820_v43 = vpack.c.bf16 %v2227_v36, %v2226_v34  ;;  %vm3048_vm1 = vmmov 0   ;;  %v3049_v44 = vmov 0.0   ;;  %v2228_v46 = vld [vmem:[%s3812_s5 + $0x20] sm:$0xff]  ;;  %v2229_v47 = vld [vmem:[%s3812_s5 + $0x28] sm:$0xff]  ;;  %s3050_s5 = smov [#allocation2]  }
  0xc1   :  { %2787 = vmatpush3.bf16.msra.mxu1 %v3020_v16  ;;  %2816 = vmatprep.subr.bf16.mxu0 %v3047_v32  ;;  %v2203_v39 = vrot.slane %v2202_v29, 4  ;;  %v2823_v33 = vpack.c.bf16 %v2229_v47, %v2228_v46  ;;  %vm2304_vm2 = vcmask 253952   ;;  %s2329_s20 = sshll.u32 %s3050_s5, 4  ;;  %vm2321_vm3 = vcmask 0   ;;  %s2330_s20 = int_to_ptr.vmem [resolvable:$true] %s2329_s20 }
  0xc2   :  { %v2216_v42 = vrot.slane %v2215_v38, 4  ;;  %s3023_s0 = scalar_lea.vmem %s2330_s20, 16  ;;  %s3027_s1 = scalar_lea.vmem %s2330_s20, 32 }
  0xc3   :  { %2150 = vmatmul.mubr.bf16.vlgmr.msra.gmra.mrb[20].mxu0 %v177_v17  ;;  %v2204_v45 = vadd.f32 %v2203_v39, %v2202_v29  ;;  %p3024_p0 = scmp.ne.s32.totalorder %s2330_s20, %s3023_s0  ;;  %p3028_p1 = scmp.lt.s32.totalorder %s2330_s20, %s2330_s20 }
  0xc4   :  { %2190 = vmatmul.mubr.bf16.vlgmr.msra.gmra.mrb[20].mxu1 %v179_v23  ;;  %2818 = vmatpush3.bf16.msra.mxu0 %v2817_v28  ;;  %v2217_v48 = vadd.f32 %v2216_v42, %v2215_v38  ;;  %p3029_p2 = scmp.lt.s32.totalorder %s3027_s1, %s3023_s0 }
  0xc5   :  { %2813 = vmatprep.mubr.msk.f32.mxu0 %vm3048_vm1, %v3049_v44  ;;  %2819 = vmatprep.subr.bf16.mxu0 %v3047_v32  ;;  %v2205_v31 = vrot.slane %v2204_v45, 2 }
  0xc6   :  { %v2218_v35 = vrot.slane %v2217_v48, 2  ;;  %p3030_p3 = por %p3029_p2, %p3028_p1 }
  0xc7   :  { %v2206_v49 = vadd.f32 %v2205_v31, %v2204_v45 }
  0xc8   :  { %2821 = vmatpush3.bf16.msra.mxu0 %v2820_v43  ;;  %v2219_v50 = vadd.f32 %v2218_v35, %v2217_v48  ;;  %p3031_p4 = pnand %p3030_p3, %p3024_p0 }
  0xc9   :  { %2822 = vmatprep.subr.bf16.mxu0 %v3047_v32  ;;  %v2207_v37 = vrot.slane %v2206_v49, 1 }
  0xca   :  { %v2220_v51 = vrot.slane %v2219_v50, 1 }
  0xcb   :  { %v2208_v52 = vadd.f32 %v2207_v37, %v2206_v49 }
  0xcc   :  { %2824 = vmatpush3.bf16.msra.mxu0 %v2823_v33  ;;  %v2221_v40 = vadd.f32 %v2220_v51, %v2219_v50 }
  0xcd   :  { %v2210_v41 = vmul.f32 0.0625, %v2208_v52 }
  0xce   :  { %v2222_v53 = vmul.f32 0.0625, %v2221_v40 }
  0xd0   :  { %v2223_v54 = vsub.f32 %v2210_v41, %v2222_v53 }
  0xd2   :  { %2814 = vmatmul.mubr.msk.f32.vlgmr.msra.gmra.mrb[24].mxu0 %vm2199_vm0, %v2223_v54 }
  0xf6   :  { %v2546_v55 = vpop.f32.mrb[0].mxu0 }
  0xf7   :  { %v2568_v56 = vpop.f32.mrb[0].mxu1  ;;  %v2547_v57 = vpop.f32.mrb[1].mxu0 }
  0xf8   :  { %v2569_v58 = vpop.f32.mrb[1].mxu1  ;;  %v2548_v59 = vadd.f32 %v2547_v57, %v2546_v55  ;;  %v2549_v61 = vpop.f32.mrb[2].mxu0 }
  0xf9   :  { %v2570_v60 = vadd.f32 %v2569_v58, %v2568_v56  ;;  %v2571_v62 = vpop.f32.mrb[2].mxu1  ;;  %v2550_v63 = vpop.f32.mrb[3].mxu0 }
  0xfa   :  { %v2572_v0 = vpop.f32.mrb[3].mxu1 }
  0xfb   :  { %v1792_v1 = vadd.f32 %v2570_v60, %v2548_v59 }
 0x116   :  { %v2590_v2 = vpop.f32.mrb[4].mxu0 }
 0x117   :  { %v2612_v3 = vpop.f32.mrb[4].mxu1  ;;  %v2591_v4 = vpop.f32.mrb[5].mxu0 }
 0x118   :  { %v2613_v5 = vpop.f32.mrb[5].mxu1  ;;  %v2592_v6 = vadd.f32 %v2591_v4, %v2590_v2  ;;  %v2593_v7 = vpop.f32.mrb[6].mxu0 }
 0x119   :  { %v2614_v8 = vadd.f32 %v2613_v5, %v2612_v3  ;;  %v2615_v9 = vpop.f32.mrb[6].mxu1  ;;  %v2594_v10 = vpop.f32.mrb[7].mxu0 }
 0x11a   :  { %v2616_v11 = vpop.f32.mrb[7].mxu1  ;;  %v1832_v12 = vadd.f32 %v2592_v6, %v1792_v1 }
 0x11c   :  { %v1872_v13 = vadd.f32 %v2614_v8, %v1832_v12 }
 0x136   :  { %v2634_v14 = vpop.f32.mrb[8].mxu0 }
 0x137   :  { %v2656_v15 = vpop.f32.mrb[8].mxu1  ;;  %v2635_v16 = vpop.f32.mrb[9].mxu0 }
 0x138   :  { %v2657_v18 = vpop.f32.mrb[9].mxu1  ;;  %v2636_v20 = vadd.f32 %v2635_v16, %v2634_v14  ;;  %v2637_v17 = vpop.f32.mrb[10].mxu0 }
 0x139   :  { %v2658_v19 = vadd.f32 %v2657_v18, %v2656_v15  ;;  %v2659_v21 = vpop.f32.mrb[10].mxu1  ;;  %v2638_v22 = vpop.f32.mrb[11].mxu0 }
 0x13a   :  { %v2660_v23 = vpop.f32.mrb[11].mxu1  ;;  %v1912_v24 = vadd.f32 %v2636_v20, %v1872_v13 }
 0x13c   :  { %v1952_v25 = vadd.f32 %v2658_v19, %v1912_v24 }
 0x156   :  { %v2678_v26 = vpop.f32.mrb[12].mxu0 }
 0x157   :  { %v2700_v27 = vpop.f32.mrb[12].mxu1  ;;  %v2679_v28 = vpop.f32.mrb[13].mxu0 }
 0x158   :  { %v2701_v29 = vpop.f32.mrb[13].mxu1  ;;  %v2680_v30 = vadd.f32 %v2679_v28, %v2678_v26  ;;  %v2681_v32 = vpop.f32.mrb[14].mxu0 }
 0x159   :  { %v2702_v34 = vadd.f32 %v2701_v29, %v2700_v27  ;;  %v2703_v36 = vpop.f32.mrb[14].mxu1  ;;  %v2682_v38 = vpop.f32.mrb[15].mxu0 }
 0x15a   :  { %v2704_v39 = vpop.f32.mrb[15].mxu1  ;;  %v1992_v42 = vadd.f32 %v2680_v30, %v1952_v25 }
 0x15c   :  { %v2032_v43 = vadd.f32 %v2702_v34, %v1992_v42 }
 0x176   :  { %v2722_v44 = vpop.f32.mrb[16].mxu0 }
 0x177   :  { %v2744_v45 = vpop.f32.mrb[16].mxu1  ;;  %v2723_v46 = vpop.f32.mrb[17].mxu0 }
 0x178   :  { %v2745_v47 = vpop.f32.mrb[17].mxu1  ;;  %v2724_v48 = vadd.f32 %v2723_v46, %v2722_v44  ;;  %v2725_v31 = vpop.f32.mrb[18].mxu0 }
 0x179   :  { %v2746_v35 = vadd.f32 %v2745_v47, %v2744_v45  ;;  %v2747_v33 = vpop.f32.mrb[18].mxu1  ;;  %v2726_v49 = vpop.f32.mrb[19].mxu0 }
 0x17a   :  { %v2748_v50 = vpop.f32.mrb[19].mxu1  ;;  %v2072_v37 = vadd.f32 %v2724_v48, %v2032_v43 }
 0x17c   :  { %v2112_v51 = vadd.f32 %v2746_v35, %v2072_v37 }
 0x196   :  { %v2766_v52 = vpop.f32.mrb[20].mxu0 }
 0x197   :  { %v2788_v40 = vpop.f32.mrb[20].mxu1  ;;  %v2767_v41 = vpop.f32.mrb[21].mxu0 }
 0x198   :  { %v2789_v53 = vpop.f32.mrb[21].mxu1  ;;  %v2768_v54 = vadd.f32 %v2767_v41, %v2766_v52  ;;  %v2769_v56 = vpop.f32.mrb[22].mxu0 }
 0x199   :  { %v2790_v55 = vadd.f32 %v2789_v53, %v2788_v40  ;;  %v2791_v57 = vpop.f32.mrb[22].mxu1  ;;  %v2770_v58 = vpop.f32.mrb[23].mxu0 }
 0x19a   :  { %v2792_v59 = vpop.f32.mrb[23].mxu1  ;;  %v2152_v60 = vadd.f32 %v2768_v54, %v2112_v51 }
 0x19c   :  { %v2192_v61 = vadd.f32 %v2790_v55, %v2152_v60 }
 0x19e   :  { %v2308_v62 = vmul.f32 %v2192_v61, %v2192_v61 }
 0x1a0   :  { %v2309_v63 = vsel %vm2304_vm2, %v2308_v62, 0.0 }
 0x1a1   :  { %2310 = vadd.xlane.f32.xlu0 %v2309_v63 }
 0x1a5   :  { %v2299_v0 = vpop.f32.mrb[24].mxu0 }
 0x1a6   :  { %v2312_v1 = vmul.f32 %v2299_v0, %v2299_v0  ;;  %v2815_v2 = vpop.f32.mrb[25].mxu0  ;;  %v2303_v3 = vmul.f32 %v2299_v0, %v2192_v61 }
 0x1a8   :  { %v2313_v4 = vsel %vm2304_vm2, %v2312_v1, 0.0  ;;  %v2305_v5 = vsel %vm2304_vm2, %v2303_v3, 0.0 }
 0x1a9   :  { %2314 = vadd.xlane.f32.xlu0 %v2313_v4  ;;  %2306 = vadd.xlane.f32.xlu1 %v2305_v5 }
 0x22e   :  { %v2311_v6 = vpop.xlane.xlu0 %2310 }
 0x236   :  { %v2315_v7 = vpop.xlane.xlu0 %2314  ;;  %v2307_v11 = vpop.xlane.xlu1 %2306 }
 0x237   :  { %v2316_v8 = vmul.f32 %v2315_v7, %v2311_v6 }
 0x239   :  { %v2317_v9 = vmax.f32 %v2316_v8, 1e-16 }
 0x23b   :  { %3021 = vrsqrt.f32 %v2317_v9 }
 0x245   :  { %v3022_v10 = vpop.eup %3021 }
 0x246   :  { %v2319_v12 = vmul.f32 %v3022_v10, %v2307_v11 }
 0x248   :  { %v2320_v13 = vsub.f32 1.0, %v2319_v12 }
 0x24a   :  { %2322 = vst.msk [vmem:[#allocation2] sm:$0x1] %vm2321_vm3, %v2320_v13 }
 0x24b   :  { %3034 = shalt.err (!%p3031_p4)
}
 0x24c   :  { %s3035_s23 = scalar_lea.hbm %s3813_s6, 16 }
 0x24d   :  { %p3036_p5 = scmp.ne.s32.totalorder %s3813_s6, %s3035_s23  ;;  %p3039_p6 = scmp.lt.u32.totalorder %s3035_s23, %s3813_s6 }
 0x24f   :  { %p3041_p7 = pnand %p3039_p6, %p3036_p5 }
 0x251   :  { %3044 = shalt.err (!%p3041_p7)
}
 0x252   :  { %2332 = dma.vmem_to_hbm [thread:$0]  %s2330_s20, 16, %s3813_s6, [#allocation3]  }
 0x253   :  { %3045 = dma.done.wait [#allocation3], 16  }
 0x254   :  { %3046 = vsyncadd [#allocation3], 4294967280 }
 0x255   :  { %2336 = vsyncpa [#allocation3], 1 }

</bundles_post_ra>
